<compile_context>
chip_gen: v7x
topology: tpu7x:2x2x1
jax: 0.10.0
libtpu: 0.0.40
codegen_flags: <defaults>
</compile_context>

<pallas_src>
import jax
import jax.numpy as jnp
from jax.experimental import pallas as pl
from jax.experimental.pallas import tpu as pltpu

L = 128
P = 2 * L          # 256
M = 2 * P          # 512
NEG_SLOPE = 0.01   # F.leaky_relu default

MAX_TB = 256       # max batch tile (multiple of 128)
OUT_LANES = 128    # lane-dense output slab width


def _round_up(a, m):
    return ((a + m - 1) // m) * m


def _leaky_relu(v):
    return jnp.where(v > 0, v, NEG_SLOPE * v)


def mlp_kernel(x_ref, w1_ref, b1_ref, w2_ref, b2_ref,
               w3_ref, b3_ref, w4_ref, b4_ref, o_ref):
    # fc1 + leaky_relu   (dropout1 is identity in eval mode)
    h = jnp.dot(x_ref[...], w1_ref[...], preferred_element_type=jnp.float32)
    h = _leaky_relu(h + b1_ref[...])
    # TODO(synk): dropout (p=0.5) is a no-op at inference; training-mode RNG masking not implemented.
    # fc2 + leaky_relu   (dropout2 is identity in eval mode)
    h = jnp.dot(h.astype(jnp.bfloat16), w2_ref[...],
                preferred_element_type=jnp.float32)
    h = _leaky_relu(h + b2_ref[...])
    # fc3 + leaky_relu
    h = jnp.dot(h.astype(jnp.bfloat16), w3_ref[...],
                preferred_element_type=jnp.float32)
    h = _leaky_relu(h + b3_ref[...])
    # fc4 (output width 1): broadcast-multiply + cross-lane reduce on VPU/XLU
    # instead of an N=1 MXU matmul; bias is a scalar read from SMEM.
    out_col = jnp.sum(h * w4_ref[...], axis=-1, keepdims=True) + b4_ref[0]
    # lane-dense store: broadcast across the 128-lane slab; wrapper slices col 0.
    o_ref[...] = jnp.broadcast_to(out_col, o_ref.shape).astype(o_ref.dtype)


def mlp_forward(x, params):
    """x: [B, D] float32. params: f32 weights/biases. Returns [B, 1] float32."""
    B, D = x.shape

    # Batch tile: big tiles for large batches, snug (16-aligned for bf16
    # sublane packing) tile for small batches.
    tb = MAX_TB if B >= MAX_TB else _round_up(max(B, 1), 16)
    B_pad = _round_up(B, tb)
    n_tiles = B_pad // tb
    if B_pad != B:
        x = jnp.pad(x, ((0, B_pad - B), (0, 0)))

    # bf16 MXU operands (accumulation stays f32 inside the kernel).
    x_bf = x.astype(jnp.bfloat16)
    w1 = params["w1"].astype(jnp.bfloat16)
    w2 = params["w2"].astype(jnp.bfloat16)
    w3 = params["w3"].astype(jnp.bfloat16)
    b1, b2, b3 = params["b1"], params["b2"], params["b3"]
    w4 = params["w4"].reshape(1, L).astype(jnp.float32)   # used on the VPU, f32
    b4 = params["b4"].reshape(1).astype(jnp.float32)      # scalar -> SMEM

    def resident(arr):
        # Whole-array block, VMEM-resident across all grid iterations.
        zeros = tuple(0 for _ in arr.shape)
        return pl.BlockSpec(arr.shape, lambda i, _z=zeros: _z)

    out = pl.pallas_call(
        mlp_kernel,
        out_shape=jax.ShapeDtypeStruct((B_pad, OUT_LANES), jnp.float32),
        grid=(n_tiles,),
        in_specs=[
            pl.BlockSpec((tb, D), lambda i: (i, 0)),            # x, tiled on batch
            resident(w1), resident(b1),
            resident(w2), resident(b2),
            resident(w3), resident(b3),
            resident(w4),
            pl.BlockSpec(memory_space=pltpu.MemorySpace.SMEM),  # b4 scalar
        ],
        out_specs=pl.BlockSpec((tb, OUT_LANES), lambda i: (i, 0)),
        compiler_params=pltpu.CompilerParams(
            dimension_semantics=("parallel",)),
    )(x_bf, w1, b1, w2, b2, w3, b3, w4, b4)

    return out[:B, 0:1]


def init_params(key, input_dim):
    """Deterministic init matching the nn.Linear shapes of Architecture."""
    ks = jax.random.split(key, 8)

    def linear(kw, kb, fan_in, fan_out):
        # PyTorch default: U(-1/sqrt(fan_in), 1/sqrt(fan_in))
        bound = 1.0 / jnp.sqrt(fan_in)
        w = jax.random.uniform(kw, (fan_in, fan_out), jnp.float32, -bound, bound)
        b = jax.random.uniform(kb, (1, fan_out), jnp.float32, -bound, bound)
        return w, b

    w1, b1 = linear(ks[0], ks[1], input_dim, M)
    w2, b2 = linear(ks[2], ks[3], M, P)
    w3, b3 = linear(ks[4], ks[5], P, L)
    w4, b4 = linear(ks[6], ks[7], L, 1)
    return dict(w1=w1, b1=b1, w2=w2, b2=b2, w3=w3, b3=b3, w4=w4, b4=b4)


def reference_forward(x, params):
    """Mirrors the kernel's numerics: bf16-quantized matmul inputs, f32 math."""
    def leaky(v):
        return jnp.where(v > 0, v, NEG_SLOPE * v)

    def q(a):
        return a.astype(jnp.bfloat16).astype(jnp.float32)

    h = leaky(q(x) @ q(params["w1"]) + params["b1"])
    h = leaky(q(h) @ q(params["w2"]) + params["b2"])
    h = leaky(q(h) @ q(params["w3"]) + params["b3"])
    return h @ params["w4"] + params["b4"]


if __name__ == "__main__":
    key = jax.random.PRNGKey(0)
    k_x, k_p = jax.random.split(key)

    BATCH = 8
    INPUT_DIM = 32  # X.shape[1] in the original module

    x = jax.random.normal(k_x, (BATCH, INPUT_DIM), dtype=jnp.float32)
    params = init_params(k_p, INPUT_DIM)

    out = mlp_forward(x, params)
    out = jax.block_until_ready(out)

    ref = reference_forward(x, params)
    assert out.shape == (BATCH, 1), out.shape
    assert jnp.allclose(out, ref, atol=2e-3, rtol=2e-3), "mismatch vs reference"

    print("KERNEL_OK")
</pallas_src>

<mosaic_0001>
module attributes {stable_mosaic.version = 11 : i64} {
  func.func @mlp_kernel(%arg0: i32, %arg1: memref<16x32xbf16, #tpu.memory_space<vmem>>, %arg2: memref<32x512xbf16, #tpu.memory_space<vmem>>, %arg3: memref<1x512xf32, #tpu.memory_space<vmem>>, %arg4: memref<512x256xbf16, #tpu.memory_space<vmem>>, %arg5: memref<1x256xf32, #tpu.memory_space<vmem>>, %arg6: memref<256x128xbf16, #tpu.memory_space<vmem>>, %arg7: memref<1x128xf32, #tpu.memory_space<vmem>>, %arg8: memref<1x128xf32, #tpu.memory_space<vmem>>, %arg9: memref<1xf32, #tpu.memory_space<smem>>, %arg10: memref<16x128xf32, #tpu.memory_space<vmem>>) attributes {dimension_semantics = [#tpu.dimension_semantics<parallel>], iteration_bounds = array<i64: 1>, scalar_prefetch = 0 : i64, scratch_operands = 0 : i64, tpu.core_type = #tpu.core_type<tc>, window_params = [{transform_indices = @transform_0, window_bounds = array<i64: 16, 32>}, {pipeline_mode = #tpu.pipeline_mode<synchronous>, transform_indices = @transform_1, window_bounds = array<i64: 32, 512>}, {pipeline_mode = #tpu.pipeline_mode<synchronous>, transform_indices = @transform_2, window_bounds = array<i64: 1, 512>}, {pipeline_mode = #tpu.pipeline_mode<synchronous>, transform_indices = @transform_3, window_bounds = array<i64: 512, 256>}, {pipeline_mode = #tpu.pipeline_mode<synchronous>, transform_indices = @transform_4, window_bounds = array<i64: 1, 256>}, {pipeline_mode = #tpu.pipeline_mode<synchronous>, transform_indices = @transform_5, window_bounds = array<i64: 256, 128>}, {pipeline_mode = #tpu.pipeline_mode<synchronous>, transform_indices = @transform_6, window_bounds = array<i64: 1, 128>}, {pipeline_mode = #tpu.pipeline_mode<synchronous>, transform_indices = @transform_7, window_bounds = array<i64: 1, 128>}, {transform_indices = @transform_8, window_bounds = array<i64: 1>}, {transform_indices = @transform_9, window_bounds = array<i64: 16, 128>}]} {
    %c0 = arith.constant 0 : index
    %c0_0 = arith.constant 0 : index
    %0 = vector.load %arg1[%c0, %c0_0] : memref<16x32xbf16, #tpu.memory_space<vmem>>, vector<16x32xbf16>
    %c0_1 = arith.constant 0 : index
    %c0_2 = arith.constant 0 : index
    %1 = vector.load %arg2[%c0_1, %c0_2] : memref<32x512xbf16, #tpu.memory_space<vmem>>, vector<32x512xbf16>
    %cst = arith.constant dense<0.000000e+00> : vector<16x512xf32>
    %2 = tpu.matmul %0, %1, %cst {dimension_numbers = #tpu.dot_dimension_numbers<[1], [0], [0], [1], [0, 0, 1, 1], [], []>} : vector<16x32xbf16>, vector<32x512xbf16>, vector<16x512xf32> -> vector<16x512xf32>
    %c0_3 = arith.constant 0 : index
    %c0_4 = arith.constant 0 : index
    %3 = vector.load %arg3[%c0_3, %c0_4] : memref<1x512xf32, #tpu.memory_space<vmem>>, vector<1x512xf32>
    %4 = vector.broadcast %3 : vector<1x512xf32> to vector<16x512xf32>
    %5 = arith.addf %2, %4 : vector<16x512xf32>
    %cst_5 = arith.constant 0.000000e+00 : f32
    %6 = vector.broadcast %cst_5 : f32 to vector<16x512xf32>
    %7 = arith.cmpf ogt, %5, %6 : vector<16x512xf32>
    %cst_6 = arith.constant 0.00999999977 : f32
    %8 = vector.broadcast %cst_6 : f32 to vector<16x512xf32>
    %9 = arith.mulf %8, %5 : vector<16x512xf32>
    %10 = arith.select %7, %5, %9 : vector<16x512xi1>, vector<16x512xf32>
    %11 = arith.truncf %10 : vector<16x512xf32> to vector<16x512xbf16>
    %c0_7 = arith.constant 0 : index
    %c0_8 = arith.constant 0 : index
    %12 = vector.load %arg4[%c0_7, %c0_8] : memref<512x256xbf16, #tpu.memory_space<vmem>>, vector<512x256xbf16>
    %cst_9 = arith.constant dense<0.000000e+00> : vector<16x256xf32>
    %13 = tpu.matmul %11, %12, %cst_9 {dimension_numbers = #tpu.dot_dimension_numbers<[1], [0], [0], [1], [0, 0, 1, 1], [], []>} : vector<16x512xbf16>, vector<512x256xbf16>, vector<16x256xf32> -> vector<16x256xf32>
    %c0_10 = arith.constant 0 : index
    %c0_11 = arith.constant 0 : index
    %14 = vector.load %arg5[%c0_10, %c0_11] : memref<1x256xf32, #tpu.memory_space<vmem>>, vector<1x256xf32>
    %15 = vector.broadcast %14 : vector<1x256xf32> to vector<16x256xf32>
    %16 = arith.addf %13, %15 : vector<16x256xf32>
    %cst_12 = arith.constant 0.000000e+00 : f32
    %17 = vector.broadcast %cst_12 : f32 to vector<16x256xf32>
    %18 = arith.cmpf ogt, %16, %17 : vector<16x256xf32>
    %cst_13 = arith.constant 0.00999999977 : f32
    %19 = vector.broadcast %cst_13 : f32 to vector<16x256xf32>
    %20 = arith.mulf %19, %16 : vector<16x256xf32>
    %21 = arith.select %18, %16, %20 : vector<16x256xi1>, vector<16x256xf32>
    %22 = arith.truncf %21 : vector<16x256xf32> to vector<16x256xbf16>
    %c0_14 = arith.constant 0 : index
    %c0_15 = arith.constant 0 : index
    %23 = vector.load %arg6[%c0_14, %c0_15] : memref<256x128xbf16, #tpu.memory_space<vmem>>, vector<256x128xbf16>
    %cst_16 = arith.constant dense<0.000000e+00> : vector<16x128xf32>
    %24 = tpu.matmul %22, %23, %cst_16 {dimension_numbers = #tpu.dot_dimension_numbers<[1], [0], [0], [1], [0, 0, 1, 1], [], []>} : vector<16x256xbf16>, vector<256x128xbf16>, vector<16x128xf32> -> vector<16x128xf32>
    %c0_17 = arith.constant 0 : index
    %c0_18 = arith.constant 0 : index
    %25 = vector.load %arg7[%c0_17, %c0_18] : memref<1x128xf32, #tpu.memory_space<vmem>>, vector<1x128xf32>
    %26 = vector.broadcast %25 : vector<1x128xf32> to vector<16x128xf32>
    %27 = arith.addf %24, %26 : vector<16x128xf32>
    %cst_19 = arith.constant 0.000000e+00 : f32
    %28 = vector.broadcast %cst_19 : f32 to vector<16x128xf32>
    %29 = arith.cmpf ogt, %27, %28 : vector<16x128xf32>
    %cst_20 = arith.constant 0.00999999977 : f32
    %30 = vector.broadcast %cst_20 : f32 to vector<16x128xf32>
    %31 = arith.mulf %30, %27 : vector<16x128xf32>
    %32 = arith.select %29, %27, %31 : vector<16x128xi1>, vector<16x128xf32>
    %c0_21 = arith.constant 0 : index
    %c0_22 = arith.constant 0 : index
    %33 = vector.load %arg8[%c0_21, %c0_22] : memref<1x128xf32, #tpu.memory_space<vmem>>, vector<1x128xf32>
    %34 = vector.broadcast %33 : vector<1x128xf32> to vector<16x128xf32>
    %35 = arith.mulf %32, %34 : vector<16x128xf32>
    %cst_23 = arith.constant dense<0.000000e+00> : vector<16xf32>
    %36 = vector.multi_reduction <add>, %35, %cst_23 [1] : vector<16x128xf32> to vector<16xf32>
    %37 = vector.shape_cast %36 : vector<16xf32> to vector<16x1xf32>
    %c0_24 = arith.constant 0 : index
    %38 = memref.load %arg9[%c0_24] : memref<1xf32, #tpu.memory_space<smem>>
    %39 = vector.broadcast %38 : f32 to vector<16x1xf32>
    %40 = arith.addf %37, %39 : vector<16x1xf32>
    %41 = vector.shape_cast %40 : vector<16x1xf32> to vector<16x1xf32>
    %42 = vector.broadcast %41 : vector<16x1xf32> to vector<16x128xf32>
    %c0_25 = arith.constant 0 : index
    %c0_26 = arith.constant 0 : index
    %43 = vector.load %arg10[%c0_25, %c0_26] : memref<16x128xf32, #tpu.memory_space<vmem>>, vector<16x128xf32>
    tpu.vector_store %arg10[%c0_25, %c0_26], %42 {strides = array<i32>} : memref<16x128xf32, #tpu.memory_space<vmem>>, vector<16x128xf32>,
    return
  }
  func.func @transform_0(%arg0: i32) -> (i32, i32) {
    %c0_i32 = arith.constant 0 : i32
    %c0_i32_0 = arith.constant 0 : i32
    return %arg0, %c0_i32 : i32, i32
  }
  func.func @transform_1(%arg0: i32) -> (i32, i32) {
    %c0_i32 = arith.constant 0 : i32
    %c0_i32_0 = arith.constant 0 : i32
    %c0_i32_1 = arith.constant 0 : i32
    return %c0_i32, %c0_i32_0 : i32, i32
  }
  func.func @transform_2(%arg0: i32) -> (i32, i32) {
    %c0_i32 = arith.constant 0 : i32
    %c0_i32_0 = arith.constant 0 : i32
    %c0_i32_1 = arith.constant 0 : i32
    return %c0_i32, %c0_i32_0 : i32, i32
  }
  func.func @transform_3(%arg0: i32) -> (i32, i32) {
    %c0_i32 = arith.constant 0 : i32
    %c0_i32_0 = arith.constant 0 : i32
    %c0_i32_1 = arith.constant 0 : i32
    return %c0_i32, %c0_i32_0 : i32, i32
  }
  func.func @transform_4(%arg0: i32) -> (i32, i32) {
    %c0_i32 = arith.constant 0 : i32
    %c0_i32_0 = arith.constant 0 : i32
    %c0_i32_1 = arith.constant 0 : i32
    return %c0_i32, %c0_i32_0 : i32, i32
  }
  func.func @transform_5(%arg0: i32) -> (i32, i32) {
    %c0_i32 = arith.constant 0 : i32
    %c0_i32_0 = arith.constant 0 : i32
    %c0_i32_1 = arith.constant 0 : i32
    return %c0_i32, %c0_i32_0 : i32, i32
  }
  func.func @transform_6(%arg0: i32) -> (i32, i32) {
    %c0_i32 = arith.constant 0 : i32
    %c0_i32_0 = arith.constant 0 : i32
    %c0_i32_1 = arith.constant 0 : i32
    return %c0_i32, %c0_i32_0 : i32, i32
  }
  func.func @transform_7(%arg0: i32) -> (i32, i32) {
    %c0_i32 = arith.constant 0 : i32
    %c0_i32_0 = arith.constant 0 : i32
    %c0_i32_1 = arith.constant 0 : i32
    return %c0_i32, %c0_i32_0 : i32, i32
  }
  func.func @transform_8(%arg0: i32) -> i32 {
    %c0_i32 = arith.constant 0 : i32
    %c0_i32_0 = arith.constant 0 : i32
    return %c0_i32 : i32
  }
  func.func @transform_9(%arg0: i32) -> (i32, i32) {
    %c0_i32 = arith.constant 0 : i32
    %c0_i32_0 = arith.constant 0 : i32
    return %arg0, %c0_i32 : i32, i32
  }
}

</mosaic_0001>

<bundles_post_ra>
// kernel: tpu_custom_call.1
= control target key start
LH: loop header
LB: loop body
LE: loop exit
PB: predicated region body
PF: predicated region fallthrough
CT: control target
= control target key end

     0   :  { %15 = vsyncpa [#allocation4], 0  ;;  %s1544_s0 = inlined_call_operand.hbm [shape: bf16[16,32], index: 0, kind: input, shape index: {}]   ;;  %s1545_s1 = inlined_call_operand.hbm [shape: bf16[32,512], index: 1, kind: input, shape index: {}]   ;;  %s1546_s2 = inlined_call_operand.vmem [shape: f32[1,512], index: 2, kind: input, shape index: {}]   ;;  %s1547_s3 = inlined_call_operand.hbm [shape: bf16[512,256], index: 3, kind: input, shape index: {}]   ;;  %s1548_s4 = inlined_call_operand.vmem [shape: f32[1,256], index: 4, kind: input, shape index: {}]   ;;  %s1549_s5 = inlined_call_operand.hbm [shape: bf16[256,128], index: 5, kind: input, shape index: {}]   ;;  %s1550_s6 = inlined_call_operand.vmem [shape: f32[1,128], index: 6, kind: input, shape index: {}]   ;;  %s1551_s7 = inlined_call_operand.vmem [shape: f32[1,128], index: 7, kind: input, shape index: {}]   ;;  %s1552_s8 = inlined_call_operand.<no memory space> [shape: f32[1], index: 8, kind: input, shape index: {}]   ;;  %s1553_s9 = inlined_call_operand.hbm [shape: f32[16,128], index: 9, kind: output, shape index: {}]  }
   0x1   :  { %16 = vsyncpa [#allocation7], 0 }
   0x2   :  { %17 = vsyncpa [#allocation10], 0 }
   0x3   :  { %18 = vsyncpa [#allocation5], 0  ;;  %s1379_s30 = smov [#allocation6]   ;;  %s1261_s13 = scalar_lea.hbm %s1545_s1, 1024 }
   0x4   :  { %s36_s10 = sshll.u32 %s1379_s30, 4  ;;  %p1262_p0 = scmp.ne.s32.totalorder %s1545_s1, %s1261_s13  ;;  %s37_s10 = int_to_ptr.vmem [resolvable:$true] %s36_s10 }
   0x5   :  { %p1265_p1 = scmp.lt.u32.totalorder %s1261_s13, %s1545_s1 }
   0x7   :  { %p1267_p2 = pnand %p1265_p1, %p1262_p0 }
   0x9   :  { %1270 = shalt.err (!%p1267_p2)
}
   0xa   :  { %s1271_s18 = scalar_lea.vmem %s37_s10, 1024  ;;  %p1276_p4 = scmp.lt.s32.totalorder %s37_s10, %s37_s10 }
   0xb   :  { %p1272_p3 = scmp.ne.s32.totalorder %s37_s10, %s1271_s18  ;;  %p1277_p5 = scmp.lt.s32.totalorder %s1271_s18, %s1271_s18 }
   0xd   :  { %p1278_p6 = por %p1277_p5, %p1276_p4 }
   0xf   :  { %p1279_p7 = pnand %p1278_p6, %p1272_p3 }
  0x11   :  { %1282 = shalt.err (!%p1279_p7)
}
  0x12   :  { %s1380_s19 = smov 256   ;;  %s1381_s20 = smov 16  }
  0x13   :  { %42 = dma.hbm_to_vmem [thread:$0]  %s1545_s1, 1024, %s37_s10, [#allocation7], %s1380_s19, %s1380_s19, %s1381_s20  }
  0x14   :  { %s1382_s23 = smov [#allocation3]   ;;  %s1283_s27 = scalar_lea.hbm %s1544_s0, 128 }
  0x15   :  { %s24_s24 = sshll.u32 %s1382_s23, 4  ;;  %p1284_p8 = scmp.ne.s32.totalorder %s1544_s0, %s1283_s27  ;;  %s25_s24 = int_to_ptr.vmem [resolvable:$true] %s24_s24 }
  0x16   :  { %p1287_p9 = scmp.lt.u32.totalorder %s1283_s27, %s1544_s0 }
  0x18   :  { %p1289_p10 = pnand %p1287_p9, %p1284_p8 }
  0x1a   :  { %1292 = shalt.err (!%p1289_p10)
}
  0x1b   :  { %s1293_s12 = scalar_lea.vmem %s25_s24, 128  ;;  %p1298_p12 = scmp.lt.s32.totalorder %s25_s24, %s25_s24 }
  0x1c   :  { %p1294_p11 = scmp.ne.s32.totalorder %s25_s24, %s1293_s12  ;;  %p1299_p13 = scmp.lt.s32.totalorder %s1293_s12, %s1293_s12 }
  0x1e   :  { %p1300_p0 = por %p1299_p13, %p1298_p12 }
  0x20   :  { %p1301_p1 = pnand %p1300_p0, %p1294_p11 }
  0x22   :  { %1304 = shalt.err (!%p1301_p1)
}
  0x23   :  { %s1383_s1 = smov 64   ;;  %s1384_s10 = smov 4  }
  0x24   :  { %30 = dma.hbm_to_vmem [thread:$0]  %s1544_s0, 128, %s25_s24, [#allocation4], %s1383_s1, %s1383_s1, %s1384_s10  }
  0x25   :  { %s1385_s15 = smov [#allocation8]   ;;  %s1305_s19 = scalar_lea.hbm %s1547_s3, 8192 }
  0x26   :  { %s50_s16 = sshll.u32 %s1385_s15, 4  ;;  %p1306_p2 = scmp.ne.s32.totalorder %s1547_s3, %s1305_s19  ;;  %s51_s16 = int_to_ptr.vmem [resolvable:$true] %s50_s16 }
  0x27   :  { %p1309_p3 = scmp.lt.u32.totalorder %s1305_s19, %s1547_s3 }
  0x29   :  { %p1311_p4 = pnand %p1309_p3, %p1306_p2 }
  0x2b   :  { %1314 = shalt.err (!%p1311_p4)
}
  0x2c   :  { %s1315_s25 = scalar_lea.vmem %s51_s16, 8192  ;;  %p1320_p6 = scmp.lt.s32.totalorder %s51_s16, %s51_s16 }
  0x2d   :  { %p1316_p5 = scmp.ne.s32.totalorder %s51_s16, %s1315_s25  ;;  %p1321_p7 = scmp.lt.s32.totalorder %s1315_s25, %s1315_s25 }
  0x2f   :  { %p1322_p8 = por %p1321_p7, %p1320_p6 }
  0x31   :  { %p1323_p9 = pnand %p1322_p8, %p1316_p5 }
  0x33   :  { %1326 = shalt.err (!%p1323_p9)
}
  0x34   :  { %s1386_s0 = smov 128   ;;  %s1387_s24 = smov 8  }
  0x35   :  { %56 = dma.hbm_to_vmem [thread:$0]  %s1547_s3, 8192, %s51_s16, [#allocation7], %s1386_s0, %s1386_s0, %s1387_s24  }
  0x36   :  { %s1388_s28 = smov [#allocation9]   ;;  %s1327_s12 = scalar_lea.hbm %s1549_s5, 2048 }
  0x37   :  { %s64_s29 = sshll.u32 %s1388_s28, 4  ;;  %p1328_p10 = scmp.ne.s32.totalorder %s1549_s5, %s1327_s12  ;;  %s65_s29 = int_to_ptr.vmem [resolvable:$true] %s64_s29 }
  0x38   :  { %p1331_p11 = scmp.lt.u32.totalorder %s1327_s12, %s1549_s5 }
  0x3a   :  { %p1333_p12 = pnand %p1331_p11, %p1328_p10 }
  0x3c   :  { %1336 = shalt.err (!%p1333_p12)
}
  0x3d   :  { %s1337_s18 = scalar_lea.vmem %s65_s29, 2048  ;;  %p1342_p0 = scmp.lt.s32.totalorder %s65_s29, %s65_s29 }
  0x3e   :  { %p1338_p13 = scmp.ne.s32.totalorder %s65_s29, %s1337_s18  ;;  %p1343_p1 = scmp.lt.s32.totalorder %s1337_s18, %s1337_s18 }
  0x40   :  { %p1344_p2 = por %p1343_p1, %p1342_p0 }
  0x42   :  { %p1345_p3 = pnand %p1344_p2, %p1338_p13 }
  0x44   :  { %1348 = shalt.err (!%p1345_p3)
}
  0x45   :  { %70 = dma.hbm_to_vmem [thread:$0]  %s1549_s5, 2048, %s65_s29, [#allocation10], %s1383_s1, %s1383_s1, %s1384_s10  }
  0x46   :  { %1371 = dma.done.wait [#allocation4], 128  }
  0x47   :  { %1372 = vsyncadd [#allocation4], 4294967168 }
  0x48   :  { %1373 = dma.done.wait [#allocation7], 9216  }
  0x49   :  { %1374 = vsyncadd [#allocation7], 4294958080 }
  0x4a   :  { %1375 = dma.done.wait [#allocation10], 2048  }
  0x4b   :  { %1376 = vsyncadd [#allocation10], 4294965248  ;;  %v1389_v0 = vmov 0   ;;  %v1136_v1 = vld [vmem:[#allocation6 + $0x4] ss:$16 sps:$4 sm:$0xff]   ;;  %v1142_v6 = vld [vmem:[#allocation3] sm:$0xff]  }
  0x4c   :  { %203 = vmatprep.mubr.bf16.mxu0 %v1389_v0  ;;  %v1138_v2 = vld [vmem:[#allocation6] ss:$16 sps:$4 sm:$0xff]   ;;  %171 = vmatprep.subr.bf16.mxu0 %v1136_v1  ;;  %v1139_v3 = vld [vmem:[#allocation6 + $0x24] ss:$16 sps:$4 sm:$0xff]   ;;  %v1145_v5 = vld [vmem:[#allocation6 + $0xc] ss:$16 sps:$4 sm:$0xff]  }
  0x4d   :  { %172 = vmatpush1.bf16.msra.mxu0 %v1138_v2  ;;  %v1141_v4 = vld [vmem:[#allocation6 + $0x20] ss:$16 sps:$4 sm:$0xff]   ;;  %v1143_v7 = vld [vmem:[#allocation6 + $0x8] ss:$16 sps:$4 sm:$0xff]   ;;  %vm167_vm0 = vcmask 261120   ;;  %s1390_s23 = smov [#allocation11]  }
  0x4e   :  { %173 = vmatprep.subr.bf16.mxu0 %v1139_v3  ;;  %v1149_v8 = vld [vmem:[#allocation8 + $0x4] ss:$8 sps:$4 sm:$0xff]   ;;  %v1151_v9 = vld [vmem:[#allocation8] ss:$8 sps:$4 sm:$0xff]   ;;  %v1152_v11 = vld [vmem:[#allocation8 + $0x14] ss:$8 sps:$4 sm:$0xff]  }
  0x4f   :  { %v1148_v10 = vld [vmem:[#allocation6 + $0x2c] ss:$16 sps:$4 sm:$0xff]   ;;  %681 = vmatprep.subr.bf16.mxu1 %v1149_v8  ;;  %v1154_v12 = vld [vmem:[#allocation8 + $0x10] ss:$8 sps:$4 sm:$0xff]   ;;  %v1157_v16 = vld [vmem:[#allocation8 + $0x100] ss:$8 sps:$4 sm:$0xff]  }
  0x50   :  { %682 = vmatpush1.bf16.msra.mxu1 %v1151_v9  ;;  %v1146_v13 = vld [vmem:[#allocation6 + $0x28] ss:$16 sps:$4 sm:$0xff]   ;;  %v1155_v14 = vld [vmem:[#allocation8 + $0x24] ss:$8 sps:$4 sm:$0xff]   ;;  %v1161_v18 = vld [vmem:[#allocation8 + $0x34] ss:$8 sps:$4 sm:$0xff]  }
  0x51   :  { %174 = vmatpush1.bf16.msra.mxu0 %v1141_v4  ;;  %683 = vmatprep.subr.bf16.mxu1 %v1152_v11  ;;  %v1159_v15 = vld [vmem:[#allocation8 + $0x104] ss:$8 sps:$4 sm:$0xff]   ;;  %v1160_v17 = vld [vmem:[#allocation8 + $0x20] ss:$8 sps:$4 sm:$0xff]   ;;  %v1165_v19 = vld [vmem:[#allocation8 + $0x114] ss:$8 sps:$4 sm:$0xff]   ;;  %v102_v11 = vlaneseq }
  0x52   :  { %214 = vmatprep.subr.bf16.mxu0 %v1145_v5  ;;  %v1166_v20 = vld [vmem:[#allocation8 + $0x30] ss:$8 sps:$4 sm:$0xff]   ;;  %v1167_v22 = vld [vmem:[#allocation8 + $0x44] ss:$8 sps:$4 sm:$0xff]   ;;  %v1169_v24 = vld [vmem:[#allocation8 + $0x120] ss:$8 sps:$4 sm:$0xff]  }
  0x53   :  { %v1163_v21 = vld [vmem:[#allocation8 + $0x110] ss:$8 sps:$4 sm:$0xff]   ;;  %v1171_v23 = vld [vmem:[#allocation8 + $0x124] ss:$8 sps:$4 sm:$0xff]   ;;  %v1172_v25 = vld [vmem:[#allocation8 + $0x40] ss:$8 sps:$4 sm:$0xff]  }
  0x54   :  { %1010 = vmatmul.mubr.msk.bf16.vlgmr.msra.gmra.mrb[0].mxu0 %vm167_vm0, %v1142_v6  ;;  %684 = vmatpush1.bf16.msra.mxu1 %v1154_v12  ;;  %v1173_v26 = vld [vmem:[#allocation8 + $0x54] ss:$8 sps:$4 sm:$0xff]   ;;  %v1178_v28 = vld [vmem:[#allocation8 + $0x50] ss:$8 sps:$4 sm:$0xff]   ;;  %v1179_v30 = vld [vmem:[#allocation8 + $0x64] ss:$8 sps:$4 sm:$0xff]  }
  0x55   :  { %215 = vmatpush1.bf16.msra.mxu0 %v1143_v7  ;;  %246 = vmatprep.mubr.bf16.mxu0 %v1389_v0  ;;  %v1177_v27 = vld [vmem:[#allocation8 + $0x134] ss:$8 sps:$4 sm:$0xff]   ;;  %v1175_v29 = vld [vmem:[#allocation8 + $0x130] ss:$8 sps:$4 sm:$0xff]   ;;  %v1183_v31 = vld [vmem:[#allocation8 + $0x144] ss:$8 sps:$4 sm:$0xff]  }
  0x56   :  { %216 = vmatprep.subr.bf16.mxu0 %v1148_v10  ;;  %685 = vmatprep.subr.bf16.mxu1 %v1155_v14  ;;  %v1181_v32 = vld [vmem:[#allocation8 + $0x140] ss:$8 sps:$4 sm:$0xff]   ;;  %v1185_v34 = vld [vmem:[#allocation8 + $0x74] ss:$8 sps:$4 sm:$0xff]   ;;  %v1190_v36 = vld [vmem:[#allocation8 + $0x70] ss:$8 sps:$4 sm:$0xff]  }
  0x57   :  { %v1184_v33 = vld [vmem:[#allocation8 + $0x60] ss:$8 sps:$4 sm:$0xff]   ;;  %v1189_v35 = vld [vmem:[#allocation8 + $0x154] ss:$8 sps:$4 sm:$0xff]   ;;  %v1187_v37 = vld [vmem:[#allocation8 + $0x150] ss:$8 sps:$4 sm:$0xff]  }
  0x58   :  { %686 = vmatpush1.bf16.msra.mxu1 %v1160_v17  ;;  %v1191_v38 = vld [vmem:[#allocation8 + $0x84] ss:$8 sps:$4 sm:$0xff]   ;;  %v1193_v40 = vld [vmem:[#allocation8 + $0x160] ss:$8 sps:$4 sm:$0xff]   ;;  %v1197_v42 = vld [vmem:[#allocation8 + $0x94] ss:$8 sps:$4 sm:$0xff]  }
  0x59   :  { %217 = vmatpush1.bf16.msra.mxu0 %v1146_v13  ;;  %687 = vmatprep.subr.bf16.mxu1 %v1161_v18  ;;  %v1195_v39 = vld [vmem:[#allocation8 + $0x164] ss:$8 sps:$4 sm:$0xff]   ;;  %v1196_v41 = vld [vmem:[#allocation8 + $0x80] ss:$8 sps:$4 sm:$0xff]   ;;  %v1201_v43 = vld [vmem:[#allocation8 + $0x174] ss:$8 sps:$4 sm:$0xff]  }
  0x5a   :  { %724 = vmatprep.subr.bf16.mxu0 %v1159_v15  ;;  %v1202_v44 = vld [vmem:[#allocation8 + $0x90] ss:$8 sps:$4 sm:$0xff]   ;;  %v1203_v46 = vld [vmem:[#allocation8 + $0xa4] ss:$8 sps:$4 sm:$0xff]   ;;  %v1208_v48 = vld [vmem:[#allocation8 + $0xa0] ss:$8 sps:$4 sm:$0xff]  }
  0x5b   :  { %v1199_v45 = vld [vmem:[#allocation8 + $0x170] ss:$8 sps:$4 sm:$0xff]   ;;  %v1207_v47 = vld [vmem:[#allocation8 + $0x184] ss:$8 sps:$4 sm:$0xff]   ;;  %v1205_v49 = vld [vmem:[#allocation8 + $0x180] ss:$8 sps:$4 sm:$0xff]  }
  0x5c   :  { %1011 = vmatmul.mubr.msk.bf16.vlgmr.msra.gmra.mrb[4].mxu0 %vm167_vm0, %v1142_v6  ;;  %688 = vmatpush1.bf16.msra.mxu1 %v1166_v20  ;;  %v1209_v50 = vld [vmem:[#allocation8 + $0xb4] ss:$8 sps:$4 sm:$0xff]   ;;  %v1214_v52 = vld [vmem:[#allocation8 + $0xb0] ss:$8 sps:$4 sm:$0xff]   ;;  %v1215_v54 = vld [vmem:[#allocation8 + $0xc4] ss:$8 sps:$4 sm:$0xff]  }
  0x5d   :  { %725 = vmatpush1.bf16.msra.mxu0 %v1157_v16  ;;  %689 = vmatprep.subr.bf16.mxu1 %v1167_v22  ;;  %v1213_v51 = vld [vmem:[#allocation8 + $0x194] ss:$8 sps:$4 sm:$0xff]   ;;  %v1211_v53 = vld [vmem:[#allocation8 + $0x190] ss:$8 sps:$4 sm:$0xff]   ;;  %v1219_v55 = vld [vmem:[#allocation8 + $0x1a4] ss:$8 sps:$4 sm:$0xff]  }
  0x5e   :  { %726 = vmatprep.subr.bf16.mxu0 %v1165_v19  ;;  %v1220_v56 = vld [vmem:[#allocation8 + $0xc0] ss:$8 sps:$4 sm:$0xff]   ;;  %v1221_v58 = vld [vmem:[#allocation8 + $0xd4] ss:$8 sps:$4 sm:$0xff]   ;;  %v1223_v60 = vld [vmem:[#allocation8 + $0x1b0] ss:$8 sps:$4 sm:$0xff]  }
  0x5f   :  { %v1217_v57 = vld [vmem:[#allocation8 + $0x1a0] ss:$8 sps:$4 sm:$0xff]   ;;  %v1225_v59 = vld [vmem:[#allocation8 + $0x1b4] ss:$8 sps:$4 sm:$0xff]   ;;  %v1226_v61 = vld [vmem:[#allocation8 + $0xd0] ss:$8 sps:$4 sm:$0xff]  }
  0x60   :  { %690 = vmatpush1.bf16.msra.mxu1 %v1172_v25  ;;  %v1227_v62 = vld [vmem:[#allocation8 + $0xe4] ss:$8 sps:$4 sm:$0xff]   ;;  %v1229_v0 = vld [vmem:[#allocation8 + $0x1c0] ss:$8 sps:$4 sm:$0xff]   ;;  %v1233_v2 = vld [vmem:[#allocation8 + $0xf4] ss:$8 sps:$4 sm:$0xff]  }
  0x61   :  { %727 = vmatpush1.bf16.msra.mxu0 %v1163_v21  ;;  %691 = vmatprep.subr.bf16.mxu1 %v1173_v26  ;;  %v1231_v63 = vld [vmem:[#allocation8 + $0x1c4] ss:$8 sps:$4 sm:$0xff]   ;;  %v1232_v1 = vld [vmem:[#allocation8 + $0xe0] ss:$8 sps:$4 sm:$0xff]   ;;  %v1237_v3 = vld [vmem:[#allocation8 + $0x1d4] ss:$8 sps:$4 sm:$0xff]  }
  0x62   :  { %728 = vmatprep.subr.bf16.mxu0 %v1171_v23  ;;  %v1235_v4 = vld [vmem:[#allocation8 + $0x1d0] ss:$8 sps:$4 sm:$0xff]   ;;  %v1241_v6 = vld [vmem:[#allocation8 + $0x1e4] ss:$8 sps:$4 sm:$0xff]   ;;  %v1239_v7 = vld [vmem:[#allocation8 + $0x1e0] ss:$8 sps:$4 sm:$0xff]  }
  0x63   :  { %v1238_v5 = vld [vmem:[#allocation8 + $0xf0] ss:$8 sps:$4 sm:$0xff]   ;;  %v1244_v8 = vld [vmem:[#allocation8 + $0x1f4] ss:$8 sps:$4 sm:$0xff]   ;;  %v1245_v10 = vld [vmem:[#allocation9 + $0x40] sm:$0xff]   ;;  %v1500_v12 = vshrl.u32 %v102_v11, 7 }
  0x64   :  { %692 = vmatpush1.bf16.msra.mxu1 %v1178_v28  ;;  %v1242_v9 = vld [vmem:[#allocation8 + $0x1f0] ss:$8 sps:$4 sm:$0xff]   ;;  %s987_s25 = sshll.u32 %s1390_s23, 4  ;;  %s988_s25 = int_to_ptr.vmem [resolvable:$true] %s987_s25 }
  0x65   :  { %729 = vmatpush1.bf16.msra.mxu0 %v1169_v24  ;;  %693 = vmatprep.subr.bf16.mxu1 %v1179_v30  ;;  %v104_v13 = vsub.s32 0, %v1500_v12  ;;  %v100_v14 = vld [vmem:[%s1546_s2] sm:$0xf]  ;;  %v108_v15 = vsub.s32 1, %v1500_v12  ;;  %v112_v21 = vsub.s32 2, %v1500_v12  ;;  %v116_v24 = vsub.s32 3, %v1500_v12  ;;  %p1354_p5 = scmp.lt.s32.totalorder %s988_s25, %s988_s25 }
  0x66   :  { %730 = vmatprep.subr.bf16.mxu0 %v1177_v27 }
  0x67   :  { %v105_v16 = vrot.slane %v100_v14, %v104_v13  ;;  %v109_v17 = vrot.slane %v100_v14, %v108_v15 }
  0x68   :  { %694 = vmatpush1.bf16.msra.mxu1 %v1184_v33  ;;  %v117_v33 = vrot.slane %v100_v14, %v116_v24 }
  0x69   :  { %731 = vmatpush1.bf16.msra.mxu0 %v1175_v29  ;;  %695 = vmatprep.subr.bf16.mxu1 %v1185_v34 }
  0x6a   :  { %732 = vmatprep.subr.bf16.mxu0 %v1183_v31  ;;  %v113_v31 = vrot.slane %v100_v14, %v112_v21 }
  0x6c   :  { %696 = vmatpush1.bf16.msra.mxu1 %v1190_v36 }
  0x6d   :  { %733 = vmatpush1.bf16.msra.mxu0 %v1181_v32  ;;  %697 = vmatprep.subr.bf16.mxu1 %v1191_v38 }
  0x6e   :  { %734 = vmatprep.subr.bf16.mxu0 %v1189_v35 }
  0x70   :  { %698 = vmatpush1.bf16.msra.mxu1 %v1196_v41 }
  0x71   :  { %735 = vmatpush1.bf16.msra.mxu0 %v1187_v37  ;;  %699 = vmatprep.subr.bf16.mxu1 %v1197_v42 }
  0x72   :  { %736 = vmatprep.subr.bf16.mxu0 %v1195_v39 }
  0x74   :  { %700 = vmatpush1.bf16.msra.mxu1 %v1202_v44 }
  0x75   :  { %737 = vmatpush1.bf16.msra.mxu0 %v1193_v40  ;;  %701 = vmatprep.subr.bf16.mxu1 %v1203_v46  ;;  %v1247_v46 = vld [vmem:[#allocation9 + $0x48] sm:$0xff]  }
  0x76   :  { %738 = vmatprep.subr.bf16.mxu0 %v1201_v43  ;;  %v1246_v43 = vld [vmem:[#allocation9] sm:$0xff]  }
  0x78   :  { %702 = vmatpush1.bf16.msra.mxu1 %v1208_v48 }
  0x79   :  { %739 = vmatpush1.bf16.msra.mxu0 %v1199_v45  ;;  %703 = vmatprep.subr.bf16.mxu1 %v1209_v50 }
  0x7a   :  { %740 = vmatprep.subr.bf16.mxu0 %v1207_v47 }
  0x7c   :  { %704 = vmatpush1.bf16.msra.mxu1 %v1214_v52 }
  0x7d   :  { %741 = vmatpush1.bf16.msra.mxu0 %v1205_v49  ;;  %705 = vmatprep.subr.bf16.mxu1 %v1215_v54 }
  0x7e   :  { %742 = vmatprep.subr.bf16.mxu0 %v1213_v51 }
  0x80   :  { %706 = vmatpush1.bf16.msra.mxu1 %v1220_v56 }
  0x81   :  { %743 = vmatpush1.bf16.msra.mxu0 %v1211_v53  ;;  %707 = vmatprep.subr.bf16.mxu1 %v1221_v58  ;;  %v1248_v53 = vld [vmem:[#allocation9 + $0x8] sm:$0xff]  }
  0x82   :  { %744 = vmatprep.subr.bf16.mxu0 %v1219_v55  ;;  %v1249_v55 = vld [vmem:[#allocation9 + $0x50] sm:$0xff]  }
  0x84   :  { %708 = vmatpush1.bf16.msra.mxu1 %v1226_v61 }
  0x85   :  { %745 = vmatpush1.bf16.msra.mxu0 %v1217_v57  ;;  %709 = vmatprep.subr.bf16.mxu1 %v1227_v62  ;;  %v1250_v62 = vld [vmem:[#allocation9 + $0x10] sm:$0xff]  }
  0x86   :  { %746 = vmatprep.subr.bf16.mxu0 %v1225_v59 }
  0x88   :  { %710 = vmatpush1.bf16.msra.mxu1 %v1232_v1  ;;  %v1253_v1 = vld [vmem:[#allocation9 + $0x60] sm:$0xff]  }
  0x89   :  { %747 = vmatpush1.bf16.msra.mxu0 %v1223_v60  ;;  %711 = vmatprep.subr.bf16.mxu1 %v1233_v2  ;;  %v1254_v2 = vld [vmem:[#allocation9 + $0x20] sm:$0xff]  }
  0x8a   :  { %748 = vmatprep.subr.bf16.mxu0 %v1231_v63  ;;  %v1251_v63 = vld [vmem:[#allocation9 + $0x58] sm:$0xff]  }
  0x8c   :  { %712 = vmatpush1.bf16.msra.mxu1 %v1238_v5  ;;  %v1257_v5 = vld [vmem:[#allocation9 + $0x70] sm:$0xff]  }
  0x8d   :  { %749 = vmatpush1.bf16.msra.mxu0 %v1229_v0  ;;  %1094 = vmatprep.subr.bf16.mxu1 %v1245_v10  ;;  %v1252_v0 = vld [vmem:[#allocation9 + $0x18] sm:$0xff]  }
  0x8e   :  { %750 = vmatprep.subr.bf16.mxu0 %v1237_v3  ;;  %v1255_v3 = vld [vmem:[#allocation9 + $0x68] sm:$0xff]  }
  0x91   :  { %751 = vmatpush1.bf16.msra.mxu0 %v1235_v4  ;;  %v1256_v4 = vld [vmem:[#allocation9 + $0x28] sm:$0xff]  }
  0x92   :  { %752 = vmatprep.subr.bf16.mxu0 %v1241_v6  ;;  %v1258_v6 = vld [vmem:[#allocation9 + $0x30] sm:$0xff]  }
  0x95   :  { %753 = vmatpush1.bf16.msra.mxu0 %v1239_v7  ;;  %v1259_v7 = vld [vmem:[#allocation9 + $0x78] sm:$0xff]  }
  0x96   :  { %754 = vmatprep.subr.bf16.mxu0 %v1244_v8  ;;  %v1260_v8 = vld [vmem:[#allocation9 + $0x38] sm:$0xff]  }
  0x99   :  { %755 = vmatpush1.bf16.msra.mxu0 %v1242_v9  ;;  %v349_v9 = vld [vmem:[%s1548_s4] sm:$0x3] }
 0x127   :  { %v205_v18 = vpop.f32.mrb[0].mxu0 }
 0x128   :  { %v206_v19 = vadd.f32 %v205_v18, %v105_v16  ;;  %v207_v20 = vpop.f32.mrb[1].mxu0  ;;  %v358_v18 = vrot.slane %v349_v9, %v108_v15 }
 0x129   :  { %v208_v22 = vadd.f32 %v207_v20, %v109_v17  ;;  %v209_v23 = vpop.f32.mrb[2].mxu0 }
 0x12a   :  { %v265_v25 = vmul.f32 0.01, %v206_v19  ;;  %v210_v26 = vadd.f32 %v209_v23, %v105_v16  ;;  %v211_v27 = vpop.f32.mrb[3].mxu0  ;;  %vm257_vm1 = vcmp.gt.f32.partialorder %v206_v19, 0.0  ;;  %v354_v16 = vrot.slane %v349_v9, %v104_v13 }
 0x12b   :  { %v266_v28 = vmul.f32 0.01, %v208_v22  ;;  %v212_v29 = vadd.f32 %v211_v27, %v109_v17  ;;  %vm258_vm3 = vcmp.gt.f32.partialorder %v208_v22, 0.0 }
 0x12c   :  { %vm261_vm2 = vcmp.gt.f32.partialorder %v210_v26, 0.0  ;;  %v269_v30 = vmul.f32 0.01, %v210_v26  ;;  %v273_v34 = vsel %vm257_vm1, %v206_v19, %v265_v25 }
 0x12d   :  { %v270_v32 = vmul.f32 0.01, %v212_v29  ;;  %vm262_vm4 = vcmp.gt.f32.partialorder %v212_v29, 0.0  ;;  %v274_v37 = vsel %vm258_vm3, %v208_v22, %v266_v28 }
 0x12e   :  { %v277_v35 = vsel %vm261_vm2, %v210_v26, %v269_v30 }
 0x12f   :  { %v248_v36 = vpop.f32.mrb[4].mxu0  ;;  %v278_v38 = vsel %vm262_vm4, %v212_v29, %v270_v32  ;;  %v281_v39 = vpack.c.bf16 %v277_v35, %v273_v34 }
 0x130   :  { %v249_v40 = vadd.f32 %v248_v36, %v113_v31  ;;  %v250_v41 = vpop.f32.mrb[5].mxu0  ;;  %v282_v42 = vpack.c.bf16 %v278_v38, %v274_v37 }
 0x131   :  { %v251_v44 = vadd.f32 %v250_v41, %v117_v33  ;;  %v252_v45 = vpop.f32.mrb[6].mxu0 }
 0x132   :  { %v267_v47 = vmul.f32 0.01, %v249_v40  ;;  %v253_v48 = vadd.f32 %v252_v45, %v113_v31  ;;  %v254_v49 = vpop.f32.mrb[7].mxu0  ;;  %713 = vmatprep.mubr.bf16.mxu1 %v282_v42  ;;  %vm259_vm5 = vcmp.gt.f32.partialorder %v249_v40, 0.0 }
 0x133   :  { %v268_v50 = vmul.f32 0.01, %v251_v44  ;;  %v255_v51 = vadd.f32 %v254_v49, %v117_v33  ;;  %714 = vmatmul.mubr.bf16.vlgmr.msra.gmra.mrb[0].mxu1 %v281_v39  ;;  %vm260_vm6 = vcmp.gt.f32.partialorder %v251_v44, 0.0  ;;  %v1076_v39 = vld [vmem:[%s1550_s6] ss:$0 sm:$0xff] }
 0x134   :  { %vm263_vm7 = vcmp.gt.f32.partialorder %v253_v48, 0.0  ;;  %v271_v52 = vmul.f32 0.01, %v253_v48  ;;  %1095 = vmatpush3.bf16.msra.mxu1 %v1246_v43  ;;  %v275_v56 = vsel %vm259_vm5, %v249_v40, %v267_v47 }
 0x135   :  { %vm264_vm8 = vcmp.gt.f32.partialorder %v255_v51, 0.0  ;;  %v272_v54 = vmul.f32 0.01, %v255_v51  ;;  %1096 = vmatprep.subr.bf16.mxu1 %v1247_v46  ;;  %v276_v59 = vsel %vm260_vm6, %v251_v44, %v268_v50 }
 0x136   :  { %v279_v57 = vsel %vm263_vm7, %v253_v48, %v271_v52  ;;  %v1093_v48 = vld [vmem:[%s1551_s7] ss:$0 sm:$0xff]  ;;  %s1349_s7 = scalar_lea.vmem %s988_s25, 256 }
 0x137   :  { %v283_v58 = vpack.c.bf16 %v279_v57, %v275_v56  ;;  %v280_v60 = vsel %vm264_vm8, %v255_v51, %v272_v54  ;;  %v977_v54 = vstv %s1552_s8  ;;  %p1350_p4 = scmp.ne.s32.totalorder %s988_s25, %s1349_s7  ;;  %p1355_p6 = scmp.lt.s32.totalorder %s1349_s7, %s1349_s7 }
 0x138   :  { %v284_v61 = vpack.c.bf16 %v280_v60, %v276_v59  ;;  %1097 = vmatpush3.bf16.msra.mxu1 %v1248_v53 }
 0x139   :  { %1098 = vmatprep.subr.bf16.mxu1 %v1249_v55  ;;  %p1356_p7 = por %p1355_p6, %p1354_p5 }
 0x13a   :  { %756 = vmatprep.mubr.bf16.mxu0 %v284_v61 }
 0x13b   :  { %757 = vmatmul.mubr.bf16.vlgmr.msra.gmra.mrb[8].mxu0 %v283_v58  ;;  %p1357_p8 = pnand %p1356_p7, %p1350_p4 }
 0x13c   :  { %1099 = vmatpush3.bf16.msra.mxu1 %v1250_v62 }
 0x13d   :  { %1100 = vmatprep.subr.bf16.mxu1 %v1251_v63 }
 0x140   :  { %1101 = vmatpush3.bf16.msra.mxu1 %v1252_v0 }
 0x141   :  { %1102 = vmatprep.subr.bf16.mxu1 %v1253_v1 }
 0x144   :  { %1103 = vmatpush3.bf16.msra.mxu1 %v1254_v2 }
 0x145   :  { %1104 = vmatprep.subr.bf16.mxu1 %v1255_v3 }
 0x148   :  { %1105 = vmatpush3.bf16.msra.mxu1 %v1256_v4 }
 0x149   :  { %1106 = vmatprep.subr.bf16.mxu1 %v1257_v5 }
 0x14c   :  { %1107 = vmatpush3.bf16.msra.mxu1 %v1258_v6 }
 0x14d   :  { %1108 = vmatprep.subr.bf16.mxu1 %v1259_v7 }
 0x150   :  { %1109 = vmatpush3.bf16.msra.mxu1 %v1260_v8 }
 0x206   :  { %v715_v10 = vpop.f32.mrb[0].mxu1 }
 0x207   :  { %v717_v11 = vpop.f32.mrb[1].mxu1  ;;  %v716_v19 = vadd.f32 %v715_v10, %v354_v16 }
 0x208   :  { %v719_v14 = vpop.f32.mrb[2].mxu1  ;;  %v718_v20 = vadd.f32 %v717_v11, %v358_v18 }
 0x209   :  { %v721_v17 = vpop.f32.mrb[3].mxu1  ;;  %v720_v22 = vadd.f32 %v719_v14, %v354_v16 }
 0x20a   :  { %v722_v25 = vadd.f32 %v721_v17, %v358_v18 }
 0x20e   :  { %v758_v21 = vpop.f32.mrb[8].mxu0 }
 0x20f   :  { %v759_v23 = vadd.f32 %v758_v21, %v716_v19  ;;  %v760_v24 = vpop.f32.mrb[9].mxu0 }
 0x210   :  { %v761_v26 = vadd.f32 %v760_v24, %v718_v20  ;;  %v762_v27 = vpop.f32.mrb[10].mxu0 }
 0x211   :  { %v771_v28 = vmul.f32 0.01, %v759_v23  ;;  %v763_v29 = vadd.f32 %v762_v27, %v720_v22  ;;  %v764_v30 = vpop.f32.mrb[11].mxu0  ;;  %vm767_vm9 = vcmp.gt.f32.partialorder %v759_v23, 0.0 }
 0x212   :  { %v772_v31 = vmul.f32 0.01, %v761_v26  ;;  %v765_v32 = vadd.f32 %v764_v30, %v722_v25  ;;  %vm768_vm10 = vcmp.gt.f32.partialorder %v761_v26, 0.0 }
 0x213   :  { %vm769_vm11 = vcmp.gt.f32.partialorder %v763_v29, 0.0  ;;  %v773_v13 = vmul.f32 0.01, %v763_v29  ;;  %v775_v15 = vsel %vm767_vm9, %v759_v23, %v771_v28 }
 0x214   :  { %vm770_vm12 = vcmp.gt.f32.partialorder %v765_v32, 0.0  ;;  %v774_v12 = vmul.f32 0.01, %v765_v32  ;;  %v776_v35 = vsel %vm768_vm10, %v761_v26, %v772_v31 }
 0x215   :  { %v777_v33 = vsel %vm769_vm11, %v763_v29, %v773_v13 }
 0x216   :  { %v779_v34 = vpack.c.bf16 %v777_v33, %v775_v15  ;;  %v778_v36 = vsel %vm770_vm12, %v765_v32, %v774_v12 }
 0x217   :  { %v780_v37 = vpack.c.bf16 %v778_v36, %v776_v35 }
 0x219   :  { %948 = vmatprep.mubr.bf16.mxu1 %v780_v37 }
 0x21a   :  { %949 = vmatmul.mubr.bf16.vlgmr.msra.gmra.mrb[4].mxu1 %v779_v34 }
 0x2ed   :  { %v1110_v38 = vpop.f32.mrb[4].mxu1 }
 0x2ee   :  { %v1111_v40 = vpop.f32.mrb[5].mxu1 }
 0x2ef   :  { %v1112_v41 = vadd.f32 %v1111_v40, %v1110_v38  ;;  %v1113_v42 = vpop.f32.mrb[6].mxu1 }
 0x2f0   :  { %v1114_v43 = vpop.f32.mrb[7].mxu1 }
 0x2f1   :  { %v951_v44 = vadd.f32 %v1112_v41, %v1076_v39  ;;  %v1115_v45 = vadd.f32 %v1114_v43, %v1113_v42 }
 0x2f3   :  { %v954_v46 = vadd.f32 %v1115_v45, %v1076_v39  ;;  %vm957_vm13 = vcmp.gt.f32.partialorder %v951_v44, 0.0  ;;  %v959_v47 = vmul.f32 0.01, %v951_v44 }
 0x2f5   :  { %v961_v49 = vsel %vm957_vm13, %v951_v44, %v959_v47  ;;  %vm958_vm14 = vcmp.gt.f32.partialorder %v954_v46, 0.0  ;;  %v960_v50 = vmul.f32 0.01, %v954_v46 }
 0x2f6   :  { %v970_v51 = vmul.f32 %v1093_v48, %v961_v49 }
 0x2f7   :  { %v962_v52 = vsel %vm958_vm14, %v954_v46, %v960_v50 }
 0x2f8   :  { %972 = vadd.xlane.f32.xlu0 %v970_v51  ;;  %v971_v53 = vmul.f32 %v1093_v48, %v962_v52 }
 0x2fc   :  { %974 = vadd.xlane.f32.xlu0 %v971_v53 }
 0x385   :  { %v973_v55 = vpop.xlane.xlu0 %972 }
 0x386   :  { %v978_v56 = vadd.f32 %v977_v54, %v973_v55 }
 0x388   :  { %980 = vst [vmem:[#allocation11] sm:$0xff] %v978_v56 }
 0x389   :  { %v975_v57 = vpop.xlane.xlu0 %974 }
 0x38a   :  { %v979_v58 = vadd.f32 %v977_v54, %v975_v57 }
 0x38c   :  { %981 = vst [vmem:[#allocation11 + $0x8] sm:$0xff] %v979_v58 }
 0x38d   :  { %1360 = shalt.err (!%p1357_p8)
}
 0x38e   :  { %s1361_s8 = scalar_lea.hbm %s1553_s9, 256 }
 0x38f   :  { %p1362_p9 = scmp.ne.s32.totalorder %s1553_s9, %s1361_s8  ;;  %p1365_p10 = scmp.lt.u32.totalorder %s1361_s8, %s1553_s9 }
 0x391   :  { %p1367_p11 = pnand %p1365_p10, %p1362_p9 }
 0x393   :  { %1370 = shalt.err (!%p1367_p11)
}
 0x394   :  { %993 = dma.vmem_to_hbm [thread:$0]  %s988_s25, 256, %s1553_s9, [#allocation5], %s1386_s0, %s1386_s0, %s1387_s24  }
 0x395   :  { %1377 = dma.done.wait [#allocation5], 256  }
 0x396   :  { %1378 = vsyncadd [#allocation5], 4294967040 }
 0x397   :  { %997 = vsyncpa [#allocation4], 1 }
 0x398   :  { %998 = vsyncpa [#allocation7], 1 }
 0x399   :  { %999 = vsyncpa [#allocation10], 1 }
 0x39a   :  { %1000 = vsyncpa [#allocation5], 1 }

</bundles_post_ra>
